<compile_context>
chip_gen: v6e
topology: v6e:2x2x1
jax: 0.10.0
libtpu: 0.0.40
codegen_flags: <defaults>
</compile_context>

<pallas_src>
from functools import partial

import jax
import jax.numpy as jnp
from jax.experimental import pallas as pl
from jax.experimental.pallas import tpu as pltpu


def _leaky_relu(x, slope=0.1):
    return jnp.where(x >= 0, x, slope * x)


def encoder_kernel(x_ref,
                   w1_ref, b1_ref,
                   w2_ref, b2_ref,
                   w3_ref, b3_ref,
                   wm_ref, bm_ref,
                   out_ref):
    # x arrives as f32 (single HBM read) and is cast to bf16 for the MXU here;
    # the cast hides under DMA/MXU slack. Weights are bf16, biases f32.
    # All accumulation and the epilogue (bias add, LeakyReLU) stay in f32.
    x = x_ref[...].astype(jnp.bfloat16)

    h = jnp.dot(x, w1_ref[...], preferred_element_type=jnp.float32) + b1_ref[...]
    h = _leaky_relu(h)

    h = jnp.dot(h.astype(jnp.bfloat16), w2_ref[...],
                preferred_element_type=jnp.float32) + b2_ref[...]
    h = _leaky_relu(h)

    h = jnp.dot(h.astype(jnp.bfloat16), w3_ref[...],
                preferred_element_type=jnp.float32) + b3_ref[...]
    h = _leaky_relu(h)

    h = jnp.dot(h.astype(jnp.bfloat16), wm_ref[...],
                preferred_element_type=jnp.float32) + bm_ref[...]
    h = _leaky_relu(h)

    out_ref[...] = h.astype(out_ref.dtype)


def _round_up(x, m):
    return (x + m - 1) // m * m


def _cdiv(a, b):
    return -(-a // b)


def _vmem_budget_bytes():
    """~75% of per-core VMEM (48 MiB on v7x, 96 MiB on v5e/v6e); safe fallback 48 MiB."""
    try:
        cap = pltpu.get_tpu_info().vmem_capacity_bytes
    except Exception:
        cap = 64 * 1024 * 1024  # assume the smallest (v7x per-TC) VMEM
    return int(cap * 3 // 4)


def _choose_batch_tile(B, dims, *, max_tile, vmem_budget):
    """Pick a batch tile TB (multiple of 8) from a VMEM cost model and batch size."""
    input_dim, h1, h2, h3, m = dims

    # Bytes per activation row in VMEM:
    #   double-buffered pipelined blocks: x (f32) and out (f32)
    #   f32 intermediates for the three hidden layers + bf16 copies feeding the MXU
    per_row = 2 * 4 * input_dim + 2 * 4 * m
    per_row += 4 * (h1 + h2 + h3)
    per_row += 2 * (input_dim + h1 + h2 + h3)

    # Resident weights (bf16) / biases (f32); assume double-buffered by the pipeliner.
    w_bytes = 2 * (2 * (input_dim * h1 + h1 * h2 + h2 * h3 + h3 * m)
                   + 4 * (h1 + h2 + h3 + m))

    avail = max(vmem_budget - w_bytes, 8 * per_row)
    tb_vmem = max(8, (avail // per_row) // 8 * 8)
    tb_cap = max(8, min(max_tile, tb_vmem))

    # Fewest tiles that respect the cap; >=2 tiles when there is enough work so the
    # "parallel" batch axis can shard across both v7x TensorCores (cheap elsewhere).
    n_tiles = _cdiv(B, tb_cap)
    if B >= 16:
        n_tiles = max(n_tiles, 2)
    tb = _round_up(_cdiv(B, n_tiles), 8)
    return tb


def prepare_params(params):
    """One-time dtype/layout prep (hoisted out of the per-call path).

    Weights -> bf16 [in, out]; biases -> f32 [1, out] (2-D for clean lane layout).
    """
    prepped = {}
    for name in ("1", "2", "3", "m"):
        w = jnp.asarray(params[f"w{name}"], jnp.float32)
        b = jnp.asarray(params[f"b{name}"], jnp.float32)
        if b.ndim == 1:
            b = b[None, :]
        prepped[f"w{name}"] = w.astype(jnp.bfloat16)
        prepped[f"b{name}"] = b
    return prepped


@partial(jax.jit, static_argnames=("max_batch_tile",))
def encoder_basic_btlnk(x, prepped, *, max_batch_tile=4096):
    """x: [B, input_dim] float32; prepped: dict from prepare_params. Returns [B, manifold_dim] f32."""
    B, input_dim = x.shape
    h1 = prepped["w1"].shape[1]
    h2 = prepped["w2"].shape[1]
    h3 = prepped["w3"].shape[1]
    m = prepped["wm"].shape[1]

    vmem_limit = _vmem_budget_bytes()
    TB = _choose_batch_tile(
        B, (input_dim, h1, h2, h3, m),
        max_tile=max_batch_tile,
        vmem_budget=int(vmem_limit * 0.85),   # headroom for Mosaic internal scratch
    )
    B_pad = _round_up(B, TB)
    if B_pad != B:
        x = jnp.pad(x, ((0, B_pad - B), (0, 0)))

    grid = (B_pad // TB,)

    def resident_spec(shape):
        # Same block index at every grid step -> stays resident in VMEM (no re-DMA).
        # TODO(synk): mark these pipeline_mode=pl.Buffered(1) once single-buffered
        # resident inputs are needed for larger hidden dims (minor VMEM saving here).
        return pl.BlockSpec(shape, lambda i: (0, 0))

    in_specs = [
        pl.BlockSpec((TB, input_dim), lambda i: (i, 0)),   # activation tile (f32)
        resident_spec(prepped["w1"].shape), resident_spec(prepped["b1"].shape),
        resident_spec(prepped["w2"].shape), resident_spec(prepped["b2"].shape),
        resident_spec(prepped["w3"].shape), resident_spec(prepped["b3"].shape),
        resident_spec(prepped["wm"].shape), resident_spec(prepped["bm"].shape),
    ]
    # True-width output block: last dim == full array dim, so a <128-lane block is legal.
    out_spec = pl.BlockSpec((TB, m), lambda i: (i, 0))

    flops = 2 * B_pad * (input_dim * h1 + h1 * h2 + h2 * h3 + h3 * m)
    bytes_accessed = (B_pad * input_dim * 4 + B_pad * m * 4
                      + 2 * (input_dim * h1 + h1 * h2 + h2 * h3 + h3 * m)
                      + 4 * (h1 + h2 + h3 + m))

    out = pl.pallas_call(
        encoder_kernel,
        out_shape=jax.ShapeDtypeStruct((B_pad, m), jnp.float32),
        grid=grid,
        in_specs=in_specs,
        out_specs=out_spec,
        compiler_params=pltpu.CompilerParams(
            dimension_semantics=("parallel",),   # megacore sharding on v7x
            vmem_limit_bytes=vmem_limit,
        ),
        cost_estimate=pl.CostEstimate(
            flops=flops, transcendentals=0, bytes_accessed=bytes_accessed),
    )(x,
      prepped["w1"], prepped["b1"],
      prepped["w2"], prepped["b2"],
      prepped["w3"], prepped["b3"],
      prepped["wm"], prepped["bm"])

    if B_pad != B:
        out = out[:B]
    return out


def init_params(key, input_dim, hidden_dim1, hidden_dim2, hidden_dim3, manifold_dim):
    """Deterministic init mimicking nn.Linear's U(-1/sqrt(fan_in), 1/sqrt(fan_in))."""
    dims = [(input_dim, hidden_dim1),
            (hidden_dim1, hidden_dim2),
            (hidden_dim2, hidden_dim3),
            (hidden_dim3, manifold_dim)]
    names = ["1", "2", "3", "m"]
    params = {}
    for (fan_in, fan_out), name in zip(dims, names):
        key, kw, kb = jax.random.split(key, 3)
        bound = 1.0 / jnp.sqrt(float(fan_in))
        params[f"w{name}"] = jax.random.uniform(
            kw, (fan_in, fan_out), jnp.float32, -bound, bound)
        params[f"b{name}"] = jax.random.uniform(
            kb, (1, fan_out), jnp.float32, -bound, bound)
    return params


def reference_forward(x, params):
    """Pure-JAX f32 reference (mirrors the PyTorch forward)."""
    def lrelu(v):
        return jnp.where(v >= 0, v, 0.1 * v)
    h = lrelu(x @ params["w1"] + params["b1"])
    h = lrelu(h @ params["w2"] + params["b2"])
    h = lrelu(h @ params["w3"] + params["b3"])
    h = lrelu(h @ params["wm"] + params["bm"])
    return h


if __name__ == "__main__":
    # Small shapes consistent with the module's constructor signature.
    batch = 8
    input_dim, hidden_dim1, hidden_dim2, hidden_dim3, manifold_dim = 64, 128, 64, 32, 16

    key = jax.random.PRNGKey(0)
    key, kx = jax.random.split(key)
    x = jax.random.normal(kx, (batch, input_dim), jnp.float32)

    params = init_params(key, input_dim, hidden_dim1, hidden_dim2,
                         hidden_dim3, manifold_dim)
    prepped = prepare_params(params)   # one-time dtype prep, outside the hot path

    out = encoder_basic_btlnk(x, prepped)
    out = jax.block_until_ready(out)

    ref = reference_forward(x, params)
    assert out.shape == (batch, manifold_dim)
    # bf16 matmul inputs with f32 accumulation -> loosened tolerance vs f32 reference
    max_err = float(jnp.max(jnp.abs(out - ref)))
    assert max_err < 5e-2, f"mismatch vs reference, max abs err = {max_err}"

    print("KERNEL_OK")
</pallas_src>

<mosaic_0001>
module attributes {stable_mosaic.version = 11 : i64} {
  func.func @encoder_kernel(%arg0: i32, %arg1: memref<8x64xf32, #tpu.memory_space<vmem>>, %arg2: memref<64x128xbf16, #tpu.memory_space<vmem>>, %arg3: memref<1x128xf32, #tpu.memory_space<vmem>>, %arg4: memref<128x64xbf16, #tpu.memory_space<vmem>>, %arg5: memref<1x64xf32, #tpu.memory_space<vmem>>, %arg6: memref<64x32xbf16, #tpu.memory_space<vmem>>, %arg7: memref<1x32xf32, #tpu.memory_space<vmem>>, %arg8: memref<32x16xbf16, #tpu.memory_space<vmem>>, %arg9: memref<1x16xf32, #tpu.memory_space<vmem>>, %arg10: memref<8x16xf32, #tpu.memory_space<vmem>>) attributes {dimension_semantics = [#tpu.dimension_semantics<parallel>], iteration_bounds = array<i64: 1>, scalar_prefetch = 0 : i64, scratch_operands = 0 : i64, tpu.core_type = #tpu.core_type<tc>, window_params = [{transform_indices = @transform_0, window_bounds = array<i64: 8, 64>}, {pipeline_mode = #tpu.pipeline_mode<synchronous>, transform_indices = @transform_1, window_bounds = array<i64: 64, 128>}, {pipeline_mode = #tpu.pipeline_mode<synchronous>, transform_indices = @transform_2, window_bounds = array<i64: 1, 128>}, {pipeline_mode = #tpu.pipeline_mode<synchronous>, transform_indices = @transform_3, window_bounds = array<i64: 128, 64>}, {pipeline_mode = #tpu.pipeline_mode<synchronous>, transform_indices = @transform_4, window_bounds = array<i64: 1, 64>}, {pipeline_mode = #tpu.pipeline_mode<synchronous>, transform_indices = @transform_5, window_bounds = array<i64: 64, 32>}, {pipeline_mode = #tpu.pipeline_mode<synchronous>, transform_indices = @transform_6, window_bounds = array<i64: 1, 32>}, {pipeline_mode = #tpu.pipeline_mode<synchronous>, transform_indices = @transform_7, window_bounds = array<i64: 32, 16>}, {pipeline_mode = #tpu.pipeline_mode<synchronous>, transform_indices = @transform_8, window_bounds = array<i64: 1, 16>}, {transform_indices = @transform_9, window_bounds = array<i64: 8, 16>}]} {
    %c0 = arith.constant 0 : index
    %c0_0 = arith.constant 0 : index
    %0 = vector.load %arg1[%c0, %c0_0] : memref<8x64xf32, #tpu.memory_space<vmem>>, vector<8x64xf32>
    %1 = arith.truncf %0 : vector<8x64xf32> to vector<8x64xbf16>
    %c0_1 = arith.constant 0 : index
    %c0_2 = arith.constant 0 : index
    %2 = vector.load %arg2[%c0_1, %c0_2] : memref<64x128xbf16, #tpu.memory_space<vmem>>, vector<64x128xbf16>
    %cst = arith.constant dense<0.000000e+00> : vector<8x128xf32>
    %3 = tpu.matmul %1, %2, %cst {dimension_numbers = #tpu.dot_dimension_numbers<[1], [0], [0], [1], [0, 0, 1, 1], [], []>} : vector<8x64xbf16>, vector<64x128xbf16>, vector<8x128xf32> -> vector<8x128xf32>
    %c0_3 = arith.constant 0 : index
    %c0_4 = arith.constant 0 : index
    %4 = vector.load %arg3[%c0_3, %c0_4] : memref<1x128xf32, #tpu.memory_space<vmem>>, vector<1x128xf32>
    %5 = vector.broadcast %4 : vector<1x128xf32> to vector<8x128xf32>
    %6 = arith.addf %3, %5 : vector<8x128xf32>
    %cst_5 = arith.constant 0.000000e+00 : f32
    %7 = vector.broadcast %cst_5 : f32 to vector<8x128xf32>
    %8 = arith.cmpf oge, %6, %7 : vector<8x128xf32>
    %cst_6 = arith.constant 1.000000e-01 : f32
    %9 = vector.broadcast %cst_6 : f32 to vector<8x128xf32>
    %10 = arith.mulf %9, %6 : vector<8x128xf32>
    %11 = arith.select %8, %6, %10 : vector<8x128xi1>, vector<8x128xf32>
    %12 = arith.truncf %11 : vector<8x128xf32> to vector<8x128xbf16>
    %c0_7 = arith.constant 0 : index
    %c0_8 = arith.constant 0 : index
    %13 = vector.load %arg4[%c0_7, %c0_8] : memref<128x64xbf16, #tpu.memory_space<vmem>>, vector<128x64xbf16>
    %cst_9 = arith.constant dense<0.000000e+00> : vector<8x64xf32>
    %14 = tpu.matmul %12, %13, %cst_9 {dimension_numbers = #tpu.dot_dimension_numbers<[1], [0], [0], [1], [0, 0, 1, 1], [], []>} : vector<8x128xbf16>, vector<128x64xbf16>, vector<8x64xf32> -> vector<8x64xf32>
    %c0_10 = arith.constant 0 : index
    %c0_11 = arith.constant 0 : index
    %15 = vector.load %arg5[%c0_10, %c0_11] : memref<1x64xf32, #tpu.memory_space<vmem>>, vector<1x64xf32>
    %16 = vector.broadcast %15 : vector<1x64xf32> to vector<8x64xf32>
    %17 = arith.addf %14, %16 : vector<8x64xf32>
    %cst_12 = arith.constant 0.000000e+00 : f32
    %18 = vector.broadcast %cst_12 : f32 to vector<8x64xf32>
    %19 = arith.cmpf oge, %17, %18 : vector<8x64xf32>
    %cst_13 = arith.constant 1.000000e-01 : f32
    %20 = vector.broadcast %cst_13 : f32 to vector<8x64xf32>
    %21 = arith.mulf %20, %17 : vector<8x64xf32>
    %22 = arith.select %19, %17, %21 : vector<8x64xi1>, vector<8x64xf32>
    %23 = arith.truncf %22 : vector<8x64xf32> to vector<8x64xbf16>
    %c0_14 = arith.constant 0 : index
    %c0_15 = arith.constant 0 : index
    %24 = vector.load %arg6[%c0_14, %c0_15] : memref<64x32xbf16, #tpu.memory_space<vmem>>, vector<64x32xbf16>
    %cst_16 = arith.constant dense<0.000000e+00> : vector<8x32xf32>
    %25 = tpu.matmul %23, %24, %cst_16 {dimension_numbers = #tpu.dot_dimension_numbers<[1], [0], [0], [1], [0, 0, 1, 1], [], []>} : vector<8x64xbf16>, vector<64x32xbf16>, vector<8x32xf32> -> vector<8x32xf32>
    %c0_17 = arith.constant 0 : index
    %c0_18 = arith.constant 0 : index
    %26 = vector.load %arg7[%c0_17, %c0_18] : memref<1x32xf32, #tpu.memory_space<vmem>>, vector<1x32xf32>
    %27 = vector.broadcast %26 : vector<1x32xf32> to vector<8x32xf32>
    %28 = arith.addf %25, %27 : vector<8x32xf32>
    %cst_19 = arith.constant 0.000000e+00 : f32
    %29 = vector.broadcast %cst_19 : f32 to vector<8x32xf32>
    %30 = arith.cmpf oge, %28, %29 : vector<8x32xf32>
    %cst_20 = arith.constant 1.000000e-01 : f32
    %31 = vector.broadcast %cst_20 : f32 to vector<8x32xf32>
    %32 = arith.mulf %31, %28 : vector<8x32xf32>
    %33 = arith.select %30, %28, %32 : vector<8x32xi1>, vector<8x32xf32>
    %34 = arith.truncf %33 : vector<8x32xf32> to vector<8x32xbf16>
    %c0_21 = arith.constant 0 : index
    %c0_22 = arith.constant 0 : index
    %35 = vector.load %arg8[%c0_21, %c0_22] : memref<32x16xbf16, #tpu.memory_space<vmem>>, vector<32x16xbf16>
    %cst_23 = arith.constant dense<0.000000e+00> : vector<8x16xf32>
    %36 = tpu.matmul %34, %35, %cst_23 {dimension_numbers = #tpu.dot_dimension_numbers<[1], [0], [0], [1], [0, 0, 1, 1], [], []>} : vector<8x32xbf16>, vector<32x16xbf16>, vector<8x16xf32> -> vector<8x16xf32>
    %c0_24 = arith.constant 0 : index
    %c0_25 = arith.constant 0 : index
    %37 = vector.load %arg9[%c0_24, %c0_25] : memref<1x16xf32, #tpu.memory_space<vmem>>, vector<1x16xf32>
    %38 = vector.broadcast %37 : vector<1x16xf32> to vector<8x16xf32>
    %39 = arith.addf %36, %38 : vector<8x16xf32>
    %cst_26 = arith.constant 0.000000e+00 : f32
    %40 = vector.broadcast %cst_26 : f32 to vector<8x16xf32>
    %41 = arith.cmpf oge, %39, %40 : vector<8x16xf32>
    %cst_27 = arith.constant 1.000000e-01 : f32
    %42 = vector.broadcast %cst_27 : f32 to vector<8x16xf32>
    %43 = arith.mulf %42, %39 : vector<8x16xf32>
    %44 = arith.select %41, %39, %43 : vector<8x16xi1>, vector<8x16xf32>
    %c0_28 = arith.constant 0 : index
    %c0_29 = arith.constant 0 : index
    %45 = vector.load %arg10[%c0_28, %c0_29] : memref<8x16xf32, #tpu.memory_space<vmem>>, vector<8x16xf32>
    tpu.vector_store %arg10[%c0_28, %c0_29], %44 {strides = array<i32>} : memref<8x16xf32, #tpu.memory_space<vmem>>, vector<8x16xf32>,
    return
  }
  func.func @transform_0(%arg0: i32) -> (i32, i32) {
    %c0_i32 = arith.constant 0 : i32
    %c0_i32_0 = arith.constant 0 : i32
    return %arg0, %c0_i32 : i32, i32
  }
  func.func @transform_1(%arg0: i32) -> (i32, i32) {
    %c0_i32 = arith.constant 0 : i32
    %c0_i32_0 = arith.constant 0 : i32
    %c0_i32_1 = arith.constant 0 : i32
    return %c0_i32, %c0_i32_0 : i32, i32
  }
  func.func @transform_2(%arg0: i32) -> (i32, i32) {
    %c0_i32 = arith.constant 0 : i32
    %c0_i32_0 = arith.constant 0 : i32
    %c0_i32_1 = arith.constant 0 : i32
    return %c0_i32, %c0_i32_0 : i32, i32
  }
  func.func @transform_3(%arg0: i32) -> (i32, i32) {
    %c0_i32 = arith.constant 0 : i32
    %c0_i32_0 = arith.constant 0 : i32
    %c0_i32_1 = arith.constant 0 : i32
    return %c0_i32, %c0_i32_0 : i32, i32
  }
  func.func @transform_4(%arg0: i32) -> (i32, i32) {
    %c0_i32 = arith.constant 0 : i32
    %c0_i32_0 = arith.constant 0 : i32
    %c0_i32_1 = arith.constant 0 : i32
    return %c0_i32, %c0_i32_0 : i32, i32
  }
  func.func @transform_5(%arg0: i32) -> (i32, i32) {
    %c0_i32 = arith.constant 0 : i32
    %c0_i32_0 = arith.constant 0 : i32
    %c0_i32_1 = arith.constant 0 : i32
    return %c0_i32, %c0_i32_0 : i32, i32
  }
  func.func @transform_6(%arg0: i32) -> (i32, i32) {
    %c0_i32 = arith.constant 0 : i32
    %c0_i32_0 = arith.constant 0 : i32
    %c0_i32_1 = arith.constant 0 : i32
    return %c0_i32, %c0_i32_0 : i32, i32
  }
  func.func @transform_7(%arg0: i32) -> (i32, i32) {
    %c0_i32 = arith.constant 0 : i32
    %c0_i32_0 = arith.constant 0 : i32
    %c0_i32_1 = arith.constant 0 : i32
    return %c0_i32, %c0_i32_0 : i32, i32
  }
  func.func @transform_8(%arg0: i32) -> (i32, i32) {
    %c0_i32 = arith.constant 0 : i32
    %c0_i32_0 = arith.constant 0 : i32
    %c0_i32_1 = arith.constant 0 : i32
    return %c0_i32, %c0_i32_0 : i32, i32
  }
  func.func @transform_9(%arg0: i32) -> (i32, i32) {
    %c0_i32 = arith.constant 0 : i32
    %c0_i32_0 = arith.constant 0 : i32
    return %arg0, %c0_i32 : i32, i32
  }
}

</mosaic_0001>

<bundles_post_ra>
// kernel: encoder_basic_btlnk.1
= control target key start
LH: loop header
LB: loop body
LE: loop exit
PB: predicated region body
PF: predicated region fallthrough
CT: control target
= control target key end

     0   :  { %v552_v1 = vmov 0.0   ;;  %vm553_vm0 = vmmov 0   ;;  %vm75_vm1 = vcmask 523264   ;;  %s705_s0 = inlined_call_operand.vmem [shape: f32[8,64], index: 0, kind: input, shape index: {}]   ;;  %s706_s1 = inlined_call_operand.vmem [shape: bf16[64,128], index: 1, kind: input, shape index: {}]   ;;  %s707_s2 = inlined_call_operand.vmem [shape: f32[1,128], index: 2, kind: input, shape index: {}]   ;;  %s708_s3 = inlined_call_operand.vmem [shape: bf16[128,64], index: 3, kind: input, shape index: {}]   ;;  %s709_s4 = inlined_call_operand.vmem [shape: f32[1,64], index: 4, kind: input, shape index: {}]   ;;  %s710_s5 = inlined_call_operand.vmem [shape: bf16[64,32], index: 5, kind: input, shape index: {}]   ;;  %s711_s6 = inlined_call_operand.vmem [shape: f32[1,32], index: 6, kind: input, shape index: {}]   ;;  %s712_s7 = inlined_call_operand.vmem [shape: bf16[32,16], index: 7, kind: input, shape index: {}]   ;;  %s713_s8 = inlined_call_operand.vmem [shape: f32[1,16], index: 8, kind: input, shape index: {}]   ;;  %s714_s9 = inlined_call_operand.hbm [shape: f32[8,16], index: 9, kind: output, shape index: {}]  }
   0x1   :  { %v512_v0 = vld [vmem:[%s706_s1 + $0x18] sm:$0xff]   ;;  %457 = vmatprep.subr.bf16.mxu0 %v552_v1  ;;  %469 = vmatprep.subr.bf16.mxu1 %v552_v1  ;;  %v513_v2 = vld [vmem:[%s706_s1 + $0x10] sm:$0xff]   ;;  %v514_v4 = vld [vmem:[%s706_s1 + $0x8] sm:$0xff]  }
   0x2   :  { %458 = vmatpush3.bf16.msra.mxu0 %v512_v0  ;;  %465 = vmatprep.mubr.msk.bf16.mxu0 %vm553_vm0, %v552_v1  ;;  %v516_v3 = vld [vmem:[%s708_s3 + $0x38] sm:$0xff]   ;;  %v517_v5 = vld [vmem:[%s708_s3 + $0x30] sm:$0xff]   ;;  %v515_v6 = vld [vmem:[%s706_s1] sm:$0xff]  }
   0x3   :  { %459 = vmatprep.subr.bf16.mxu0 %v552_v1  ;;  %485 = vmatprep.mubr.msk.bf16.mxu1 %vm553_vm0, %v552_v1  ;;  %v34_v7 = vld [vmem:[%s705_s0] sm:$0xff]  ;;  %v518_v8 = vld [vmem:[%s708_s3 + $0x28] sm:$0xff]  }
   0x4   :  { %470 = vmatpush3.bf16.msra.mxu1 %v516_v3  ;;  %v35_v9 = vpack.c.bf16 %v34_v7, %v34_v7  ;;  %v519_v10 = vld [vmem:[%s708_s3 + $0x20] sm:$0xff]  }
   0x5   :  { %471 = vmatprep.subr.bf16.mxu1 %v552_v1 }
   0x6   :  { %460 = vmatpush3.bf16.msra.mxu0 %v513_v2 }
   0x7   :  { %461 = vmatprep.subr.bf16.mxu0 %v552_v1 }
   0x8   :  { %472 = vmatpush3.bf16.msra.mxu1 %v517_v5 }
   0x9   :  { %473 = vmatprep.subr.bf16.mxu1 %v552_v1 }
   0xa   :  { %462 = vmatpush3.bf16.msra.mxu0 %v514_v4 }
   0xb   :  { %463 = vmatprep.subr.bf16.mxu0 %v552_v1 }
   0xc   :  { %474 = vmatpush3.bf16.msra.mxu1 %v518_v8 }
   0xd   :  { %475 = vmatprep.subr.bf16.mxu1 %v552_v1 }
   0xe   :  { %464 = vmatpush3.bf16.msra.mxu0 %v515_v6 }
   0xf   :  { %489 = vmatprep.subr.bf16.mxu0 %v552_v1 }
  0x10   :  { %14 = vsyncpa [#allocation3], 0  ;;  %476 = vmatpush3.bf16.msra.mxu1 %v519_v10  ;;  %v520_v11 = vld [vmem:[%s708_s3 + $0x18] sm:$0xff]   ;;  %v521_v12 = vld [vmem:[%s708_s3 + $0x10] sm:$0xff]   ;;  %vm347_vm5 = vcmask 261120   ;;  %vm394_vm7 = vcmask 130048  }
  0x11   :  { %466 = vmatmul.mubr.msk.bf16.vlgmr.msra.gmra.mxu0 %vm75_vm1, %v35_v9  ;;  %477 = vmatprep.subr.bf16.mxu1 %v552_v1  ;;  %v522_v13 = vld [vmem:[%s708_s3 + $0x8] sm:$0xff]   ;;  %v523_v14 = vld [vmem:[%s708_s3] sm:$0xff]   ;;  %v524_v15 = vld [vmem:[%s710_s5 + $0x18] sm:$0xff]  }
  0x12   :  { %497 = vmatprep.mubr.msk.bf16.mxu0 %vm553_vm0, %v552_v1  ;;  %490 = vmatpush3.bf16.msra.mxu0 %v524_v15  ;;  %v525_v16 = vld [vmem:[%s710_s5 + $0x10] sm:$0xff]   ;;  %v410_v17 = vld [vmem:[%s707_s2] ss:$0 sm:$0xff]  ;;  %v526_v26 = vld [vmem:[%s710_s5 + $0x8] sm:$0xff]  }
  0x13   :  { %491 = vmatprep.subr.bf16.mxu0 %v552_v1  ;;  %v527_v27 = vld [vmem:[%s710_s5] sm:$0xff]   ;;  %v528_v37 = vld [vmem:[%s712_s7 + $0x8] sm:$0xff]  }
  0x14   :  { %478 = vmatpush3.bf16.msra.mxu1 %v520_v11  ;;  %v416_v28 = vld [vmem:[%s709_s4] ss:$0 sm:$0xff] }
  0x15   :  { %479 = vmatprep.subr.bf16.mxu1 %v552_v1  ;;  %v529_v38 = vld [vmem:[%s712_s7] sm:$0xff]   ;;  %s554_s7 = smov [#allocation2]  }
  0x16   :  { %492 = vmatpush3.bf16.msra.mxu0 %v525_v16  ;;  %v425_v39 = vld [vmem:[%s711_s6] ss:$0 sm:$0xff]  ;;  %s402_s1 = sshll.u32 %s554_s7, 4  ;;  %s403_s1 = int_to_ptr.vmem [resolvable:$true] %s402_s1 }
  0x17   :  { %493 = vmatprep.subr.bf16.mxu0 %v552_v1  ;;  %v431_v48 = vld [vmem:[%s713_s8] ss:$0 sm:$0xff]  ;;  %s530_s6 = scalar_lea.vmem %s403_s1, 128  ;;  %p535_p1 = scmp.lt.s32.totalorder %s403_s1, %s403_s1 }
  0x18   :  { %480 = vmatpush3.bf16.msra.mxu1 %v521_v12  ;;  %p531_p0 = scmp.ne.s32.totalorder %s403_s1, %s530_s6  ;;  %p536_p2 = scmp.lt.s32.totalorder %s530_s6, %s530_s6 }
  0x19   :  { %481 = vmatprep.subr.bf16.mxu1 %v552_v1 }
  0x1a   :  { %494 = vmatpush3.bf16.msra.mxu0 %v526_v26  ;;  %p537_p3 = por %p536_p2, %p535_p1 }
  0x1b   :  { %495 = vmatprep.subr.bf16.mxu0 %v552_v1 }
  0x1c   :  { %482 = vmatpush3.bf16.msra.mxu1 %v522_v13  ;;  %p538_p4 = pnand %p537_p3, %p531_p0 }
  0x1d   :  { %483 = vmatprep.subr.bf16.mxu1 %v552_v1 }
  0x1e   :  { %496 = vmatpush3.bf16.msra.mxu0 %v527_v27 }
  0x1f   :  { %501 = vmatprep.subr.bf16.mxu0 %v552_v1 }
  0x20   :  { %484 = vmatpush3.bf16.msra.mxu1 %v523_v14 }
  0xd1   :  { %v113_v18 = vpop.f32.mrf.mxu0 }
  0xd2   :  { %v114_v19 = vadd.f32 %v410_v17, %v113_v18 }
  0xd3   :  { %v467_v20 = vpop.f32.mrf.mxu0 }
  0xd4   :  { %vm119_vm2 = vcmp.ge.f32.partialorder %v114_v19, 0.0  ;;  %v120_v21 = vmul.f32 0.1, %v114_v19 }
  0xd5   :  { %v116_v22 = vpop.f32.mrf.mxu0 }
  0xd6   :  { %v121_v23 = vsel %vm119_vm2, %v114_v19, %v120_v21 }
  0xd7   :  { %v468_v24 = vpop.f32.mrf.mxu0  ;;  %v122_v25 = vpack.c.bf16 %v121_v23, %v121_v23 }
  0xd9   :  { %486 = vmatmul.mubr.bf16.vlgmr.msra.gmra.mxu1 %v122_v25 }
 0x199   :  { %v228_v29 = vpop.f32.mrf.mxu1 }
 0x19a   :  { %v229_v30 = vadd.f32 %v416_v28, %v228_v29 }
 0x19b   :  { %v487_v31 = vpop.f32.mrf.mxu1 }
 0x19c   :  { %vm234_vm3 = vcmp.ge.f32.partialorder %v229_v30, 0.0  ;;  %v235_v32 = vmul.f32 0.1, %v229_v30 }
 0x19d   :  { %v231_v33 = vpop.f32.mrf.mxu1 }
 0x19e   :  { %v236_v34 = vsel %vm234_vm3, %v229_v30, %v235_v32 }
 0x19f   :  { %v237_v35 = vpack.c.bf16 %v236_v34, %v236_v34  ;;  %v488_v36 = vpop.f32.mrf.mxu1 }
 0x1a1   :  { %498 = vmatmul.mubr.msk.bf16.vlgmr.msra.gmra.mxu0 %vm75_vm1, %v237_v35 }
 0x1a2   :  { %505 = vmatprep.mubr.msk.bf16.mxu0 %vm553_vm0, %v552_v1  ;;  %502 = vmatpush3.bf16.msra.mxu0 %v528_v37 }
 0x1a3   :  { %503 = vmatprep.subr.bf16.mxu0 %v552_v1 }
 0x1a6   :  { %504 = vmatpush3.bf16.msra.mxu0 %v529_v38 }
 0x261   :  { %v314_v40 = vpop.f32.mrf.mxu0 }
 0x262   :  { %v315_v41 = vadd.f32 %v425_v39, %v314_v40 }
 0x263   :  { %v499_v42 = vpop.f32.mrf.mxu0 }
 0x264   :  { %vm320_vm4 = vcmp.ge.f32.partialorder %v315_v41, 0.0  ;;  %v321_v43 = vmul.f32 0.1, %v315_v41 }
 0x265   :  { %v317_v44 = vpop.f32.mrf.mxu0 }
 0x266   :  { %v322_v45 = vsel %vm320_vm4, %v315_v41, %v321_v43 }
 0x267   :  { %v323_v46 = vpack.c.bf16 %v322_v45, %v322_v45  ;;  %v500_v47 = vpop.f32.mrf.mxu0 }
 0x269   :  { %506 = vmatmul.mubr.msk.bf16.vlgmr.msra.gmra.mxu0 %vm347_vm5, %v323_v46 }
 0x329   :  { %v385_v49 = vpop.f32.mrf.mxu0 }
 0x32a   :  { %v386_v50 = vadd.f32 %v431_v48, %v385_v49 }
 0x32b   :  { %v507_v51 = vpop.f32.mrf.mxu0 }
 0x32c   :  { %v392_v52 = vmul.f32 0.1, %v386_v50  ;;  %vm391_vm6 = vcmp.ge.f32.partialorder %v386_v50, 0.0 }
 0x32d   :  { %v388_v53 = vpop.f32.mrf.mxu0 }
 0x32e   :  { %v393_v54 = vsel %vm391_vm6, %v386_v50, %v392_v52 }
 0x32f   :  { %v508_v55 = vpop.f32.mrf.mxu0  ;;  %395 = vst.msk [vmem:[#allocation2] sm:$0xff] %vm394_vm7, %v393_v54 }
 0x330   :  { %541 = shalt.err (!%p538_p4)
}
 0x331   :  { %405 = dma.vmem_to_hbm [thread:$0]  %s403_s1, 128, %s714_s9, [#allocation3]  }
 0x332   :  { %550 = dma.done.wait [#allocation3], 128  }
 0x333   :  { %551 = vsyncadd [#allocation3], 4294967168 }
 0x334   :  { %409 = vsyncpa [#allocation3], 1 }

</bundles_post_ra>
